<compile_context>
chip_gen: v7x
topology: tpu7x:2x2x1
jax: 0.10.0
libtpu: 0.0.40
codegen_flags: <defaults>
</compile_context>

<pallas_src>
import functools

import jax
import jax.numpy as jnp
from jax import lax
from jax.experimental import pallas as pl
from jax.experimental.pallas import tpu as pltpu


# ---------------------------------------------------------------------------
# Path A: small table -> VMEM-resident table + one-hot matmul on the MXU.
# ---------------------------------------------------------------------------
def _onehot_embed_kernel(vocab, ids_ref, table_ref, out_ref):
    """ids_ref: (tb, 1) int32 VMEM; table_ref: (V, F) VMEM (resident);
    out_ref: (tb, F)."""
    tb = out_ref.shape[0]
    # onehot[t, v] = (ids[t] == v); broadcast of the (tb, 1) id column across
    # the 128-wide lane axis is cheap on the VPU.
    onehot = (ids_ref[...] ==
              lax.broadcasted_iota(jnp.int32, (tb, vocab), 1)
              ).astype(table_ref.dtype)
    out_ref[...] = jnp.dot(
        onehot, table_ref[...], preferred_element_type=jnp.float32
    ).astype(out_ref.dtype)


def _embed_onehot(ids, table, tb, vmem_limit):
    n_pad = ids.shape[0]                      # multiple of tb
    vocab, features = table.shape
    grid = n_pad // tb
    itemsize = jnp.dtype(table.dtype).itemsize
    cost = pl.CostEstimate(
        flops=2 * n_pad * vocab * features,
        transcendentals=0,
        bytes_accessed=(vocab * features + 2 * n_pad * features) * itemsize
        + n_pad * 4,
    )
    return pl.pallas_call(
        functools.partial(_onehot_embed_kernel, vocab),
        grid_spec=pltpu.PrefetchScalarGridSpec(
            num_scalar_prefetch=0,
            grid=(grid,),
            in_specs=[
                # id column for this block of tokens
                pl.BlockSpec((tb, 1), lambda i: (i, 0)),
                # whole table; constant block index -> VMEM resident, fetched once
                pl.BlockSpec((vocab, features), lambda i: (0, 0)),
            ],
            out_specs=pl.BlockSpec((tb, features), lambda i: (i, 0)),
        ),
        out_shape=jax.ShapeDtypeStruct((n_pad, features), table.dtype),
        compiler_params=pltpu.CompilerParams(
            dimension_semantics=("parallel",),
            vmem_limit_bytes=vmem_limit),
        cost_estimate=cost,
    )(ids.reshape(n_pad, 1), table)


# ---------------------------------------------------------------------------
# Path B: large table -> HBM row-gather DMA, directly into the output block.
# ---------------------------------------------------------------------------
def _gather_embed_kernel(tb, nsem, ids_ref, table_ref, out_ref, sem):
    """ids_ref : (grid, tb) int32 in SMEM (scalar prefetch)
    table_ref  : (V, F) raw HBM ref (memory_space=pl.ANY)
    out_ref    : (tb, F) pipelined VMEM output block (rows DMA'd into it)
    sem        : (nsem,) DMA semaphores, round-robined."""
    i = pl.program_id(0)

    def issue(j):
        tok = ids_ref[i, j]
        pltpu.make_async_copy(
            table_ref.at[tok], out_ref.at[j], sem.at[j % nsem]).start()

    # Prime the pipeline: nsem row DMAs in flight (nsem is small -> static).
    for j in range(nsem):
        issue(j)

    # Steady state: wait for row j, then refill the freed semaphore slot with
    # row j + nsem, keeping <= nsem row DMAs outstanding at all times.
    def body(j, carry):
        # The wait descriptor only needs the right transfer size; row 0 of the
        # table is always valid for that purpose.
        pltpu.make_async_copy(
            table_ref.at[0], out_ref.at[j], sem.at[j % nsem]).wait()

        @pl.when(j + nsem < tb)
        def _():
            issue(j + nsem)

        return carry

    lax.fori_loop(0, tb, body, 0, unroll=8)


def _embed_gather(ids, table, tb, nsem, vmem_limit):
    n_pad = ids.shape[0]                      # multiple of tb
    vocab, features = table.shape
    grid = n_pad // tb
    itemsize = jnp.dtype(table.dtype).itemsize
    cost = pl.CostEstimate(
        flops=0,
        transcendentals=0,
        bytes_accessed=2 * n_pad * features * itemsize + n_pad * 4,
    )
    return pl.pallas_call(
        functools.partial(_gather_embed_kernel, tb, nsem),
        grid_spec=pltpu.PrefetchScalarGridSpec(
            num_scalar_prefetch=1,                         # ids -> SMEM
            grid=(grid,),
            in_specs=[pl.BlockSpec(memory_space=pl.ANY)],  # table stays in HBM
            out_specs=pl.BlockSpec((tb, features), lambda i, ids: (i, 0)),
            scratch_shapes=[pltpu.SemaphoreType.DMA((nsem,))],
        ),
        out_shape=jax.ShapeDtypeStruct((n_pad, features), table.dtype),
        compiler_params=pltpu.CompilerParams(
            dimension_semantics=("parallel",),
            vmem_limit_bytes=vmem_limit),
        cost_estimate=cost,
    )(ids.reshape(grid, tb), table)


# ---------------------------------------------------------------------------
# Public wrapper: nn.Embedding(vocab, features)(tokens)
# ---------------------------------------------------------------------------
def word_embedding(tokens, table, *,
                   tokens_per_step=256,
                   max_outstanding_dmas=8,
                   vmem_table_budget_bytes=8 << 20,
                   onehot_vocab_cap=2048,
                   max_prefetch_ids_per_call=16384):
    """Pallas TPU equivalent of nn.Embedding(vocab, features)(tokens).

    tokens: integer array of any shape (e.g. (B, S)).
    table : (vocab_size, features) embedding matrix.
    Returns tokens.shape + (features,), same dtype as the table.
    """
    vocab, features = table.shape
    itemsize = jnp.dtype(table.dtype).itemsize
    # Minimum output-block rows given the table dtype (f32:8, bf16:16, i8:32).
    min_rows = 8 * max(1, 4 // itemsize)

    in_shape = tokens.shape
    ids = tokens.reshape(-1).astype(jnp.int32)
    n = ids.shape[0]

    # Rows per grid step: big enough to amortize per-step pipeline overhead,
    # clamped to the (padded) problem size and floored to the sublane minimum.
    tb = max(min_rows, min(tokens_per_step, pl.cdiv(n, min_rows) * min_rows))
    tb = (tb // min_rows) * min_rows
    assert tb % min_rows == 0 and tb >= min_rows

    n_pad = pl.cdiv(n, tb) * tb
    if n_pad != n:
        # Pad with token 0 (always a valid row); padded rows are sliced off.
        ids = jnp.concatenate([ids, jnp.zeros((n_pad - n,), jnp.int32)])

    table_bytes = vocab * features * itemsize
    use_fast_path = (table_bytes <= vmem_table_budget_bytes
                     and vocab <= onehot_vocab_cap)

    # Explicit VMEM budget (v7x-safe: 64 MiB physical / 32 MiB scoped default).
    vmem_need = 2 * tb * features * itemsize + 2 * tb * 4
    if use_fast_path:
        vmem_need += table_bytes + tb * vocab * itemsize   # one-hot intermediate
    vmem_limit = int(min(48 << 20, max(16 << 20, 2 * vmem_need)))

    if use_fast_path:
        out_flat = _embed_onehot(ids, table, tb, vmem_limit)
    else:
        nsem = max(1, min(max_outstanding_dmas, tb))
        # Chunk so a single pallas_call never scalar-prefetches a huge id
        # array into SMEM (removes the SMEM-padding scalability ceiling).
        chunk = max(tb, (max_prefetch_ids_per_call // tb) * tb)
        if n_pad <= chunk:
            out_flat = _embed_gather(ids, table, tb, nsem, vmem_limit)
        else:
            parts = []
            for s in range(0, n_pad, chunk):
                e = min(s + chunk, n_pad)
                parts.append(_embed_gather(ids[s:e], table, tb, nsem, vmem_limit))
            out_flat = jnp.concatenate(parts, axis=0)

    return out_flat[:n].reshape(*in_shape, features)


if __name__ == "__main__":
    VOCAB, FEATURES = 50, 128          # F=128 -> lane-dense output stores
    B, S = 2, 8

    key = jax.random.PRNGKey(0)
    k_tok, k_emb = jax.random.split(key)
    tokens = jax.random.randint(k_tok, (B, S), 0, VOCAB, dtype=jnp.int32)
    table = (0.02 * jax.random.normal(k_emb, (VOCAB, FEATURES))).astype(jnp.float32)

    ref = jnp.take(table, tokens, axis=0)

    # Fast path: table fits the VMEM budget -> one-hot MXU lookup.
    out_fast = jax.block_until_ready(word_embedding(tokens, table))
    assert out_fast.shape == (B, S, FEATURES) and out_fast.dtype == table.dtype
    # MXU f32 matmul may not be bit-exact -> tight tolerance (wrong-row errors
    # would be ~1e-2, measured error is <1e-4).
    assert bool(jnp.allclose(out_fast, ref, atol=2e-3, rtol=0.0)), \
        "one-hot (VMEM) path mismatch vs reference embedding lookup"

    # Large-table path (forced): table kept in HBM, per-row DMA gather
    # directly into the output block.  Exact byte copy -> bitwise equal.
    out_gather = jax.block_until_ready(
        word_embedding(tokens, table, vmem_table_budget_bytes=0))
    assert out_gather.shape == (B, S, FEATURES)
    assert bool(jnp.array_equal(out_gather, ref)), \
        "HBM gather path mismatch vs reference embedding lookup"

    print("KERNEL_OK")
</pallas_src>

<mosaic_0001>
module attributes {stable_mosaic.version = 11 : i64} {
  func.func @_onehot_embed_kernel(%arg0: i32, %arg1: memref<16x1xi32, #tpu.memory_space<vmem>>, %arg2: memref<50x128xf32, #tpu.memory_space<vmem>>, %arg3: memref<16x128xf32, #tpu.memory_space<vmem>>) attributes {dimension_semantics = [#tpu.dimension_semantics<parallel>], iteration_bounds = array<i64: 1>, scalar_prefetch = 0 : i64, scratch_operands = 0 : i64, tpu.core_type = #tpu.core_type<tc>, window_params = [{transform_indices = @transform_0, window_bounds = array<i64: 16, 1>}, {pipeline_mode = #tpu.pipeline_mode<synchronous>, transform_indices = @transform_1, window_bounds = array<i64: 50, 128>}, {transform_indices = @transform_2, window_bounds = array<i64: 16, 128>}]} {
    %c0 = arith.constant 0 : index
    %c0_0 = arith.constant 0 : index
    %0 = vector.load %arg1[%c0, %c0_0] : memref<16x1xi32, #tpu.memory_space<vmem>>, vector<16x1xi32>
    %1 = tpu.iota {dimensions = array<i32: 1>} : vector<16x50xi32>
    %2 = vector.broadcast %0 : vector<16x1xi32> to vector<16x50xi32>
    %3 = arith.cmpi eq, %2, %1 : vector<16x50xi32>
    %4 = arith.extui %3 : vector<16x50xi1> to vector<16x50xi32>
    %5 = arith.sitofp %4 : vector<16x50xi32> to vector<16x50xf32>
    %c0_1 = arith.constant 0 : index
    %c0_2 = arith.constant 0 : index
    %6 = vector.load %arg2[%c0_1, %c0_2] : memref<50x128xf32, #tpu.memory_space<vmem>>, vector<50x128xf32>
    %cst = arith.constant dense<0.000000e+00> : vector<16x128xf32>
    %7 = tpu.matmul %5, %6, %cst {dimension_numbers = #tpu.dot_dimension_numbers<[1], [0], [0], [1], [0, 0, 1, 1], [], []>} : vector<16x50xf32>, vector<50x128xf32>, vector<16x128xf32> -> vector<16x128xf32>
    %c0_3 = arith.constant 0 : index
    %c0_4 = arith.constant 0 : index
    %8 = vector.load %arg3[%c0_3, %c0_4] : memref<16x128xf32, #tpu.memory_space<vmem>>, vector<16x128xf32>
    tpu.vector_store %arg3[%c0_3, %c0_4], %7 {strides = array<i32>} : memref<16x128xf32, #tpu.memory_space<vmem>>, vector<16x128xf32>,
    return
  }
  func.func @transform_0(%arg0: i32) -> (i32, i32) {
    %c0_i32 = arith.constant 0 : i32
    %c0_i32_0 = arith.constant 0 : i32
    return %arg0, %c0_i32 : i32, i32
  }
  func.func @transform_1(%arg0: i32) -> (i32, i32) {
    %c0_i32 = arith.constant 0 : i32
    %c0_i32_0 = arith.constant 0 : i32
    %c0_i32_1 = arith.constant 0 : i32
    return %c0_i32, %c0_i32_0 : i32, i32
  }
  func.func @transform_2(%arg0: i32) -> (i32, i32) {
    %c0_i32 = arith.constant 0 : i32
    %c0_i32_0 = arith.constant 0 : i32
    return %arg0, %c0_i32 : i32, i32
  }
}

</mosaic_0001>

<bundles_post_ra>
// kernel: tpu_custom_call.1
= control target key start
LH: loop header
LB: loop body
LE: loop exit
PB: predicated region body
PF: predicated region fallthrough
CT: control target
= control target key end

     0   :  { %7 = vsyncpa [#allocation3], 0  ;;  %s309_s0 = inlined_call_operand.vmem [shape: s32[16,1], index: 0, kind: input, shape index: {}]   ;;  %s310_s1 = inlined_call_operand.hbm [shape: f32[50,128], index: 1, kind: input, shape index: {}]   ;;  %s311_s2 = inlined_call_operand.hbm [shape: f32[16,128], index: 2, kind: output, shape index: {}]  }
   0x1   :  { %8 = vsyncpa [#allocation4], 0  ;;  %s252_s9 = smov [#allocation2]   ;;  %s204_s13 = scalar_lea.hbm %s310_s1, 896 }
   0x2   :  { %s16_s10 = sshll.u32 %s252_s9, 4  ;;  %p205_p0 = scmp.ne.s32.totalorder %s310_s1, %s204_s13  ;;  %s17_s10 = int_to_ptr.vmem [resolvable:$true] %s16_s10 }
   0x3   :  { %p208_p1 = scmp.lt.u32.totalorder %s204_s13, %s310_s1 }
   0x5   :  { %p210_p2 = pnand %p208_p1, %p205_p0 }
   0x7   :  { %213 = shalt.err (!%p210_p2)
}
   0x8   :  { %s214_s18 = scalar_lea.vmem %s17_s10, 896  ;;  %p219_p4 = scmp.lt.s32.totalorder %s17_s10, %s17_s10 }
   0x9   :  { %p215_p3 = scmp.ne.s32.totalorder %s17_s10, %s214_s18  ;;  %p220_p5 = scmp.lt.s32.totalorder %s214_s18, %s214_s18 }
   0xb   :  { %p221_p6 = por %p220_p5, %p219_p4 }
   0xd   :  { %p222_p7 = pnand %p221_p6, %p215_p3 }
   0xf   :  { %225 = shalt.err (!%p222_p7)
}
  0x10   :  { %s253_s19 = smov 128   ;;  %s254_s20 = smov 8  }
  0x11   :  { %22 = dma.hbm_to_vmem [thread:$0]  %s310_s1, 896, %s17_s10, [#allocation3], %s253_s19, %s253_s19, %s254_s20  }
  0x12   :  { %248 = dma.done.wait [#allocation3], 896  }
  0x13   :  { %249 = vsyncadd [#allocation3], 4294966400  ;;  %v255_v0 = vmov 0   ;;  %v26_v1 = vld [vmem:[%s309_s0] sm:$0xff]  ;;  %v43_v3 = vld [vmem:[#allocation2 + $0x8] sm:$0xff]  ;;  %vm56_vm0 = vcmask 1041408   ;;  %v28_v13 = vlaneseq }
  0x14   :  { %203 = vset.pattern.permute.xlu0 %v255_v0  ;;  %v42_v2 = vld [vmem:[#allocation2] sm:$0xff]  ;;  %v44_v4 = vld [vmem:[#allocation2 + $0x10] sm:$0xff]  ;;  %v45_v5 = vld [vmem:[#allocation2 + $0x18] sm:$0xff]  ;;  %vm49_vm1 = vcmask 408576   ;;  %v256_v16 = vmov 0.0  }
  0x15   :  { %31 = vperm.xlu0 %203, %v26_v1   ;;  %v27_v6 = vld [vmem:[%s309_s0 + $0x8] sm:$0xff]  ;;  %v185_v7 = vpack.c.bf16 %v43_v3, %v42_v2  ;;  %v189_v8 = vpack.c.bf16 %v45_v5, %v44_v4  ;;  %v46_v9 = vld [vmem:[#allocation2 + $0x20] sm:$0xff]  ;;  %v48_v12 = vld [vmem:[#allocation2 + $0x30] sm:$0x3]  ;;  %v29_v14 = vand.u32 127, %v28_v13  ;;  %s257_s0 = smov [#allocation5]  }
  0x16   :  { %v47_v10 = vld [vmem:[#allocation2 + $0x28] sm:$0xff]  ;;  %s142_s1 = sshll.u32 %s257_s0, 4  ;;  %s143_s1 = int_to_ptr.vmem [resolvable:$true] %s142_s1 }
  0x17   :  { %186 = vmatprep.subr.bf16.mxu0 %v185_v7  ;;  %v193_v11 = vpack.c.bf16 %v47_v10, %v46_v9  ;;  %s226_s27 = scalar_lea.vmem %s143_s1, 256  ;;  %p231_p9 = scmp.lt.s32.totalorder %s143_s1, %s143_s1 }
  0x18   :  { %188 = vmatpush3.bf16.msra.mxu0 %v185_v7  ;;  %p227_p8 = scmp.ne.s32.totalorder %s143_s1, %s226_s27  ;;  %p232_p10 = scmp.lt.s32.totalorder %s226_s27, %s226_s27 }
  0x19   :  { %34 = vperm.xlu0 %203, %v27_v6   ;;  %190 = vmatprep.subr.bf16.mxu0 %v189_v8 }
  0x1a   :  { %p233_p11 = por %p232_p10, %p231_p9 }
  0x1c   :  { %192 = vmatpush3.bf16.msra.mxu0 %v189_v8  ;;  %p234_p12 = pnand %p233_p11, %p227_p8 }
  0x1d   :  { %194 = vmatprep.subr.bf16.mxu0 %v193_v11 }
  0x20   :  { %196 = vmatpush3.bf16.msra.mxu0 %v193_v11 }
  0x21   :  { %180 = vmatprep.subr.msk.mxu0 %vm56_vm0, %v48_v12 }
  0x24   :  { %181 = vmatpush3.msk.msra.mxu0 %vm56_vm0, %v48_v12 }
  0x94   :  { %v32_v15 = vpop.permute.xlu0 %31 }
  0x95   :  { %vm36_vm2 = vcmp.eq.s32.totalorder %v32_v15, %v29_v14 }
  0x96   :  { %v154_v17 = vsel %vm36_vm2, 1.0, %v256_v16 }
  0x97   :  { %182 = vmatprep.mubr.msk.f32.mxu0 %vm49_vm1, %v154_v17 }
  0x98   :  { %v35_v18 = vpop.permute.xlu0 %34 }
  0x99   :  { %vm37_vm3 = vcmp.eq.s32.totalorder %v35_v18, %v29_v14 }
  0x9a   :  { %v155_v19 = vsel %vm37_vm3, 1.0, %v256_v16 }
  0x9b   :  { %183 = vmatmul.mubr.msk.f32.vlgmr.msra.gmra.mrb[0].mxu0 %vm49_vm1, %v155_v19 }
 0x16e   :  { %v184_v20 = vpop.f32.mrb[0].mxu0 }
 0x16f   :  { %136 = vst [vmem:[#allocation5 + $0x8] sm:$0xff] %v184_v20  ;;  %v126_v21 = vpop.f32.mrb[1].mxu0 }
 0x170   :  { %135 = vst [vmem:[#allocation5] sm:$0xff] %v126_v21 }
 0x171   :  { %237 = shalt.err (!%p234_p12)
}
 0x172   :  { %s238_s30 = scalar_lea.hbm %s311_s2, 256 }
 0x173   :  { %p239_p13 = scmp.ne.s32.totalorder %s311_s2, %s238_s30  ;;  %p242_p0 = scmp.lt.u32.totalorder %s238_s30, %s311_s2 }
 0x175   :  { %p244_p1 = pnand %p242_p0, %p239_p13 }
 0x177   :  { %247 = shalt.err (!%p244_p1)
}
 0x178   :  { %148 = dma.vmem_to_hbm [thread:$0]  %s143_s1, 256, %s311_s2, [#allocation4], %s253_s19, %s253_s19, %s254_s20  }
 0x179   :  { %250 = dma.done.wait [#allocation4], 256  }
 0x17a   :  { %251 = vsyncadd [#allocation4], 4294967040 }
 0x17b   :  { %152 = vsyncpa [#allocation3], 1 }
 0x17c   :  { %153 = vsyncpa [#allocation4], 1 }

</bundles_post_ra>
